<compile_context>
chip_gen: v7x
topology: tpu7x:2x2x1
jax: 0.10.0
libtpu: 0.0.40
codegen_flags: <defaults>
</compile_context>

<pallas_src>
import functools

import jax
import jax.numpy as jnp
from jax import lax
from jax.experimental import pallas as pl
from jax.experimental.pallas import tpu as pltpu

_LANE = 128
_SUB = 8
_TARGET_BLOCK_BYTES = 1 << 20  # ~1 MiB per input block (f32)


# ----------------------------- kernels ------------------------------------ #
def _partial_sum_kernel(gt_ref, pred_ref, out_ref, *, squared, block_rows,
                        valid_rows):
    """Per-block partial sum of |gt-pred| or (gt-pred)^2.

    Writes the block's scalar partial sum into element [0, 0] of its own
    (8, 128) output tile (rest zeros); the wrapper sums all tiles.
    """
    d = gt_ref[...].astype(jnp.float32) - pred_ref[...].astype(jnp.float32)
    v = d * d if squared else jnp.abs(d)
    if valid_rows is not None:
        # Last grid step may read past the end of the slab (garbage rows).
        row = (pl.program_id(0) * block_rows
               + lax.broadcasted_iota(jnp.int32, v.shape, 0))
        v = jnp.where(row < valid_rows, v, 0.0)
    s = jnp.sum(v)
    r = lax.broadcasted_iota(jnp.int32, (_SUB, _LANE), 0)
    c = lax.broadcasted_iota(jnp.int32, (_SUB, _LANE), 1)
    out_ref[...] = jnp.where((r == 0) & (c == 0), s, 0.0)


def _elementwise_kernel(gt_ref, pred_ref, out_ref, *, squared):
    """Per-element |gt-pred| or (gt-pred)^2 (reduction='none')."""
    d = gt_ref[...].astype(jnp.float32) - pred_ref[...].astype(jnp.float32)
    out_ref[...] = (d * d if squared else jnp.abs(d)).astype(out_ref.dtype)


# ----------------------------- helpers ------------------------------------ #
def _pick_lanes(n):
    """Widest lane-multiple width that divides n (zero-copy reshape)."""
    for w in (1024, 512, 256, 128):
        if n % w == 0:
            return w
    return _LANE  # will require a (small) pad


def _to_slab(x, lanes):
    """Flatten to (rows, lanes); pad with zeros only when strictly needed."""
    flat = x.reshape(-1)
    n = flat.shape[0]
    rows = pl.cdiv(n, lanes)
    padded = rows * lanes
    if padded != n:
        flat = jnp.pad(flat, (0, padded - n))  # copy only in the ragged case
    return flat.reshape(rows, lanes)


# ----------------------------- wrapper ------------------------------------ #
def restruction_loss(gt, pred, distance="l1", reduction="elementwise_mean",
                     *, _lanes=None, _block_rows=None):
    """Pallas equivalent of RestructionLoss(distance, reduction)(gt, pred)."""
    if distance == "l1":
        squared = False
    elif distance == "mse":
        squared = True
    else:
        raise NotImplementedError()

    assert gt.shape == pred.shape
    out_dtype = jnp.promote_types(gt.dtype, pred.dtype)
    n = 1
    for s in gt.shape:
        n *= int(s)

    lanes = int(_lanes) if _lanes is not None else _pick_lanes(n)
    gt2d = _to_slab(gt, lanes)
    pred2d = _to_slab(pred, lanes)
    rows = gt2d.shape[0]

    # ~1 MiB f32 input blocks: big enough to amortize the ~0.35 us per-step
    # overhead, small enough that double-buffered VMEM fits every generation's
    # scoped default (v5e 16 MiB / v6e,v7x 32 MiB).
    if _block_rows is not None:
        block_rows = int(_block_rows)
    else:
        block_rows = max(_SUB, _TARGET_BLOCK_BYTES // (lanes * 4))
    if block_rows >= rows:
        block_rows = rows                               # single full block
    else:
        block_rows = max(_SUB, (block_rows // _SUB) * _SUB)  # sublane aligned

    grid_len = pl.cdiv(rows, block_rows)
    blk = pl.BlockSpec((block_rows, lanes), lambda i: (i, 0))
    # Only mask when the last block overhangs the slab.
    valid_rows = rows if rows % block_rows != 0 else None

    if reduction == "elementwise_mean":
        partial = pl.pallas_call(
            functools.partial(_partial_sum_kernel, squared=squared,
                              block_rows=block_rows, valid_rows=valid_rows),
            out_shape=jax.ShapeDtypeStruct((grid_len * _SUB, _LANE),
                                           jnp.float32),
            grid_spec=pltpu.PrefetchScalarGridSpec(
                num_scalar_prefetch=0,
                grid=(grid_len,),
                in_specs=[blk, blk],
                out_specs=pl.BlockSpec((_SUB, _LANE), lambda i: (i, 0)),
            ),
            compiler_params=pltpu.CompilerParams(
                dimension_semantics=("parallel",)),
        )(gt2d, pred2d)
        # Tiny cross-block reduction + mean in the wrapper (also sums the two
        # TensorCores' halves on v7x, where "parallel" splits the grid).
        return (jnp.sum(partial) / n).astype(out_dtype)

    elif reduction == "none":
        out2d = pl.pallas_call(
            functools.partial(_elementwise_kernel, squared=squared),
            out_shape=jax.ShapeDtypeStruct((rows, lanes), out_dtype),
            grid_spec=pltpu.PrefetchScalarGridSpec(
                num_scalar_prefetch=0,
                grid=(grid_len,),
                in_specs=[blk, blk],
                out_specs=blk,
            ),
            compiler_params=pltpu.CompilerParams(
                dimension_semantics=("parallel",)),
        )(gt2d, pred2d)
        out_flat = out2d.reshape(-1)
        if out_flat.shape[0] != n:     # only slice if padding was added
            out_flat = out_flat[:n]
        return out_flat.reshape(gt.shape)

    else:
        raise NotImplementedError()


# ------------------------------- main -------------------------------------- #
if __name__ == "__main__":
    key = jax.random.PRNGKey(0)
    k1, k2, k3, k4 = jax.random.split(key, 4)

    # NCHW inputs, matching the PyTorch module's typical conv-style usage.
    gt = jax.random.normal(k1, (2, 4, 16, 16), dtype=jnp.float32)
    pred = jax.random.normal(k2, (2, 4, 16, 16), dtype=jnp.float32)

    l1_mean = restruction_loss(gt, pred, "l1", "elementwise_mean")
    mse_mean = restruction_loss(gt, pred, "mse", "elementwise_mean")
    l1_none = restruction_loss(gt, pred, "l1", "none")
    mse_none = restruction_loss(gt, pred, "mse", "none")
    jax.block_until_ready((l1_mean, mse_mean, l1_none, mse_none))

    assert jnp.allclose(l1_mean, jnp.mean(jnp.abs(gt - pred)),
                        atol=1e-5, rtol=1e-5)
    assert jnp.allclose(mse_mean, jnp.mean((gt - pred) ** 2),
                        atol=1e-5, rtol=1e-5)
    assert jnp.allclose(l1_none, jnp.abs(gt - pred), atol=1e-5, rtol=1e-5)
    assert jnp.allclose(mse_none, (gt - pred) ** 2, atol=1e-5, rtol=1e-5)
    assert l1_none.shape == gt.shape

    # Exercise the multi-block grid + partial last-block (tail mask) path.
    gt2 = jax.random.normal(k3, (2, 4, 16, 18), dtype=jnp.float32)
    pred2 = jax.random.normal(k4, (2, 4, 16, 18), dtype=jnp.float32)
    l1_mean2 = restruction_loss(gt2, pred2, "l1", "elementwise_mean",
                                _lanes=128, _block_rows=8)
    l1_none2 = restruction_loss(gt2, pred2, "l1", "none",
                                _lanes=128, _block_rows=8)
    jax.block_until_ready((l1_mean2, l1_none2))
    assert jnp.allclose(l1_mean2, jnp.mean(jnp.abs(gt2 - pred2)),
                        atol=1e-5, rtol=1e-5)
    assert jnp.allclose(l1_none2, jnp.abs(gt2 - pred2), atol=1e-5, rtol=1e-5)

    print("KERNEL_OK")
</pallas_src>

<mosaic_0001>
module attributes {stable_mosaic.version = 11 : i64} {
  func.func @_partial_sum_kernel(%arg0: i32, %arg1: memref<2x1024xf32, #tpu.memory_space<vmem>>, %arg2: memref<2x1024xf32, #tpu.memory_space<vmem>>, %arg3: memref<8x128xf32, #tpu.memory_space<vmem>>) attributes {dimension_semantics = [#tpu.dimension_semantics<parallel>], iteration_bounds = array<i64: 1>, scalar_prefetch = 0 : i64, scratch_operands = 0 : i64, tpu.core_type = #tpu.core_type<tc>, window_params = [{transform_indices = @transform_0, window_bounds = array<i64: 2, 1024>}, {transform_indices = @transform_1, window_bounds = array<i64: 2, 1024>}, {transform_indices = @transform_2, window_bounds = array<i64: 8, 128>}]} {
    %c0 = arith.constant 0 : index
    %c0_0 = arith.constant 0 : index
    %0 = vector.load %arg1[%c0, %c0_0] : memref<2x1024xf32, #tpu.memory_space<vmem>>, vector<2x1024xf32>
    %c0_1 = arith.constant 0 : index
    %c0_2 = arith.constant 0 : index
    %1 = vector.load %arg2[%c0_1, %c0_2] : memref<2x1024xf32, #tpu.memory_space<vmem>>, vector<2x1024xf32>
    %2 = arith.subf %0, %1 : vector<2x1024xf32>
    %3 = math.absf %2 : vector<2x1024xf32>
    %4 = vector.shape_cast %3 : vector<2x1024xf32> to vector<1x2x1024xf32>
    %cst = arith.constant dense<0.000000e+00> : vector<1xf32>
    %5 = vector.multi_reduction <add>, %4, %cst [1, 2] : vector<1x2x1024xf32> to vector<1xf32>
    %6 = vector.shape_cast %5 : vector<1xf32> to vector<1x1x1xf32>
    %7 = vector.extract %6[0, 0, 0] : f32 from vector<1x1x1xf32>
    %8 = tpu.iota {dimensions = array<i32: 0>} : vector<8x128xi32>
    %9 = tpu.iota {dimensions = array<i32: 1>} : vector<8x128xi32>
    %c0_i32 = arith.constant 0 : i32
    %10 = vector.broadcast %c0_i32 : i32 to vector<8x128xi32>
    %11 = arith.cmpi eq, %8, %10 : vector<8x128xi32>
    %c0_i32_3 = arith.constant 0 : i32
    %12 = vector.broadcast %c0_i32_3 : i32 to vector<8x128xi32>
    %13 = arith.cmpi eq, %9, %12 : vector<8x128xi32>
    %14 = arith.andi %11, %13 : vector<8x128xi1>
    %cst_4 = arith.constant 0.000000e+00 : f32
    %15 = vector.broadcast %7 : f32 to vector<8x128xf32>
    %16 = vector.broadcast %cst_4 : f32 to vector<8x128xf32>
    %17 = arith.select %14, %15, %16 : vector<8x128xi1>, vector<8x128xf32>
    %c0_5 = arith.constant 0 : index
    %c0_6 = arith.constant 0 : index
    %18 = vector.load %arg3[%c0_5, %c0_6] : memref<8x128xf32, #tpu.memory_space<vmem>>, vector<8x128xf32>
    tpu.vector_store %arg3[%c0_5, %c0_6], %17 {strides = array<i32>} : memref<8x128xf32, #tpu.memory_space<vmem>>, vector<8x128xf32>,
    return
  }
  func.func @transform_0(%arg0: i32) -> (i32, i32) {
    %c0_i32 = arith.constant 0 : i32
    %c0_i32_0 = arith.constant 0 : i32
    return %arg0, %c0_i32 : i32, i32
  }
  func.func @transform_1(%arg0: i32) -> (i32, i32) {
    %c0_i32 = arith.constant 0 : i32
    %c0_i32_0 = arith.constant 0 : i32
    return %arg0, %c0_i32 : i32, i32
  }
  func.func @transform_2(%arg0: i32) -> (i32, i32) {
    %c0_i32 = arith.constant 0 : i32
    %c0_i32_0 = arith.constant 0 : i32
    return %arg0, %c0_i32 : i32, i32
  }
}

</mosaic_0001>

<bundles_post_ra>
// kernel: tpu_custom_call.1
= control target key start
LH: loop header
LB: loop body
LE: loop exit
PB: predicated region body
PF: predicated region fallthrough
CT: control target
= control target key end

     0   :  { %7 = vsyncpa [#allocation3], 0  ;;  %s280_s0 = inlined_call_operand.hbm [shape: f32[2,1024], index: 0, kind: input, shape index: {}]   ;;  %s281_s1 = inlined_call_operand.hbm [shape: f32[2,1024], index: 1, kind: input, shape index: {}]   ;;  %s282_s2 = inlined_call_operand.hbm [shape: f32[8,128], index: 2, kind: output, shape index: {}]  }
   0x1   :  { %8 = vsyncpa [#allocation6], 0 }
   0x2   :  { %9 = vsyncpa [#allocation4], 0  ;;  %s217_s9 = smov [#allocation2]   ;;  %s218_s11 = smov [#allocation5]  }
   0x3   :  { %s16_s10 = sshll.u32 %s217_s9, 4  ;;  %s26_s12 = sshll.u32 %s218_s11, 4  ;;  %s17_s10 = int_to_ptr.vmem [resolvable:$true] %s16_s10  ;;  %s27_s12 = int_to_ptr.vmem [resolvable:$true] %s26_s12 }
   0x4   :  { %s145_s15 = scalar_lea.hbm %s280_s0, 256 }
   0x5   :  { %p146_p0 = scmp.ne.s32.totalorder %s280_s0, %s145_s15  ;;  %p149_p1 = scmp.lt.u32.totalorder %s145_s15, %s280_s0 }
   0x7   :  { %p151_p2 = pnand %p149_p1, %p146_p0 }
   0x9   :  { %154 = shalt.err (!%p151_p2)
}
   0xa   :  { %s155_s20 = scalar_lea.vmem %s17_s10, 256  ;;  %p160_p4 = scmp.lt.s32.totalorder %s17_s10, %s17_s10 }
   0xb   :  { %p156_p3 = scmp.ne.s32.totalorder %s17_s10, %s155_s20  ;;  %p161_p5 = scmp.lt.s32.totalorder %s155_s20, %s155_s20 }
   0xd   :  { %p162_p6 = por %p161_p5, %p160_p4 }
   0xf   :  { %p163_p7 = pnand %p162_p6, %p156_p3 }
  0x11   :  { %166 = shalt.err (!%p163_p7)
}
  0x12   :  { %19 = dma.hbm_to_vmem [thread:$0]  %s280_s0, 256, %s17_s10, [#allocation3]  }
  0x13   :  { %s167_s25 = scalar_lea.hbm %s281_s1, 256 }
  0x14   :  { %p168_p8 = scmp.ne.s32.totalorder %s281_s1, %s167_s25  ;;  %p171_p9 = scmp.lt.u32.totalorder %s167_s25, %s281_s1 }
  0x16   :  { %p173_p10 = pnand %p171_p9, %p168_p8 }
  0x18   :  { %176 = shalt.err (!%p173_p10)
}
  0x19   :  { %s177_s30 = scalar_lea.vmem %s27_s12, 256  ;;  %p182_p12 = scmp.lt.s32.totalorder %s27_s12, %s27_s12 }
  0x1a   :  { %p178_p11 = scmp.ne.s32.totalorder %s27_s12, %s177_s30  ;;  %p183_p13 = scmp.lt.s32.totalorder %s177_s30, %s177_s30 }
  0x1c   :  { %p184_p0 = por %p183_p13, %p182_p12 }
  0x1e   :  { %p185_p1 = pnand %p184_p0, %p178_p11 }
  0x20   :  { %188 = shalt.err (!%p185_p1)
}
  0x21   :  { %29 = dma.hbm_to_vmem [thread:$0]  %s281_s1, 256, %s27_s12, [#allocation6]  }
  0x22   :  { %211 = dma.done.wait [#allocation3], 256  }
  0x23   :  { %212 = vsyncadd [#allocation3], 4294967040 }
  0x24   :  { %213 = dma.done.wait [#allocation6], 256  }
  0x25   :  { %214 = vsyncadd [#allocation6], 4294967040  ;;  %v50_v0 = vlaneseq  ;;  %v219_v1 = vmov 1983009808   ;;  %v36_v5 = vld [vmem:[#allocation2] sm:$0xff]  ;;  %v37_v6 = vld [vmem:[#allocation2 + $0x8] sm:$0xff] }
  0x26   :  { %v48_v2 = vunpack.c.l.s4 %v219_v1  ;;  %v38_v7 = vld [vmem:[#allocation5] sm:$0xff]  ;;  %v39_v8 = vld [vmem:[#allocation5 + $0x8] sm:$0xff]  ;;  %vm88_vm0 = vcmask 1041408   ;;  %s220_s1 = smov [#allocation7]  }
  0x27   :  { %v51_v4 = vshrl.u32 %v50_v0, 7  ;;  %v40_v9 = vsub.f32 %v36_v5, %v38_v7  ;;  %v41_v11 = vsub.f32 %v37_v6, %v39_v8  ;;  %v116_v46 = vand.u32 127, %v50_v0  ;;  %s129_s4 = sshll.u32 %s220_s1, 4  ;;  %s130_s4 = int_to_ptr.vmem [resolvable:$true] %s129_s4 }
  0x28   :  { %v49_v3 = vunpack.c.0.s8 %v48_v2  ;;  %s189_s6 = scalar_lea.vmem %s130_s4, 128  ;;  %p194_p3 = scmp.lt.s32.totalorder %s130_s4, %s130_s4 }
  0x29   :  { %v42_v12 = vand.u32 2147483647, %v40_v9  ;;  %v43_v13 = vand.u32 2147483647, %v41_v11  ;;  %vm117_vm1 = vcmp.eq.s32.totalorder %v51_v4, 0  ;;  %vm118_vm2 = vcmp.eq.s32.totalorder %v116_v46, 0  ;;  %p190_p2 = scmp.ne.s32.totalorder %s130_s4, %s189_s6  ;;  %p195_p4 = scmp.lt.s32.totalorder %s189_s6, %s189_s6 }
  0x2a   :  { %v52_v10 = vsub.s32 %v49_v3, %v51_v4  ;;  %vm119_vm3 = vmand %vm117_vm1, %vm118_vm2 }
  0x2b   :  { %v46_v14 = vcombine.high %v42_v12, %v42_v12  ;;  %v63_v16 = vcombine.high %v43_v13, %v43_v13  ;;  %p196_p5 = por %p195_p4, %p194_p3 }
  0x2c   :  { %v53_v15 = vrot.slane %v42_v12, %v52_v10  ;;  %v70_v19 = vrot.slane %v43_v13, %v52_v10 }
  0x2d   :  { %v60_v17 = vrot.slane %v46_v14, %v52_v10  ;;  %v77_v25 = vrot.slane %v63_v16, %v52_v10  ;;  %p197_p6 = pnand %p196_p5, %p190_p2 }
  0x2e   :  { %v61_v18 = vcombine.high %v53_v15, %v53_v15  ;;  %v89_v20 = vsel %vm88_vm0, %v53_v15, 0.0  ;;  %v78_v26 = vcombine.high %v70_v19, %v70_v19  ;;  %v96_v29 = vsel %vm88_vm0, %v70_v19, 0.0 }
  0x2f   :  { %v62_v21 = vcombine.high %v60_v17, %v60_v17  ;;  %v92_v23 = vsel %vm88_vm0, %v60_v17, 0.0  ;;  %v79_v31 = vcombine.high %v77_v25, %v77_v25  ;;  %v100_v34 = vsel %vm88_vm0, %v77_v25, 0.0 }
  0x30   :  { %v90_v22 = vsel %vm88_vm0, %v61_v18, 0.0  ;;  %v98_v32 = vsel %vm88_vm0, %v78_v26, 0.0 }
  0x31   :  { %v91_v24 = vadd.f32 %v90_v22, %v89_v20  ;;  %v94_v27 = vsel %vm88_vm0, %v62_v21, 0.0  ;;  %v102_v36 = vsel %vm88_vm0, %v79_v31, 0.0 }
  0x33   :  { %v93_v28 = vadd.f32 %v92_v23, %v91_v24 }
  0x35   :  { %v95_v30 = vadd.f32 %v94_v27, %v93_v28 }
  0x37   :  { %v97_v33 = vadd.f32 %v96_v29, %v95_v30 }
  0x39   :  { %v99_v35 = vadd.f32 %v98_v32, %v97_v33 }
  0x3b   :  { %v101_v37 = vadd.f32 %v100_v34, %v99_v35 }
  0x3d   :  { %v103_v38 = vadd.f32 %v102_v36, %v101_v37 }
  0x3f   :  { %104 = vadd.xlane.f32.xlu0 %v103_v38 }
  0xcc   :  { %v105_v39 = vpop.xlane.xlu0 %104 }
  0xcd   :  { %v106_v40 = vrot.slane %v105_v39, 4 }
  0xcf   :  { %v107_v41 = vadd.f32 %v106_v40, %v105_v39 }
  0xd1   :  { %v108_v42 = vrot.slane %v107_v41, 2 }
  0xd3   :  { %v109_v43 = vadd.f32 %v108_v42, %v107_v41 }
  0xd5   :  { %v110_v44 = vrot.slane %v109_v43, 1 }
  0xd7   :  { %v111_v45 = vadd.f32 %v110_v44, %v109_v43 }
  0xd9   :  { %139 = vpush %v111_v45 }
 0x10a   :  { %s140_s5 = spop %139 }
 0x10b   :  { %v120_v47 = vstv %s140_s5 }
 0x10c   :  { %v121_v48 = vsel %vm119_vm3, %v120_v47, 0.0 }
 0x10d   :  { %122 = vst [vmem:[#allocation7] sm:$0xff] %v121_v48 }
 0x10e   :  { %200 = shalt.err (!%p197_p6)
}
 0x10f   :  { %s201_s9 = scalar_lea.hbm %s282_s2, 128 }
 0x110   :  { %p202_p7 = scmp.ne.s32.totalorder %s282_s2, %s201_s9  ;;  %p205_p8 = scmp.lt.u32.totalorder %s201_s9, %s282_s2 }
 0x112   :  { %p207_p9 = pnand %p205_p8, %p202_p7 }
 0x114   :  { %210 = shalt.err (!%p207_p9)
}
 0x115   :  { %132 = dma.vmem_to_hbm [thread:$0]  %s130_s4, 128, %s282_s2, [#allocation4]  }
 0x116   :  { %215 = dma.done.wait [#allocation4], 128  }
 0x117   :  { %216 = vsyncadd [#allocation4], 4294967168 }
 0x118   :  { %136 = vsyncpa [#allocation3], 1 }
 0x119   :  { %137 = vsyncpa [#allocation6], 1 }
 0x11a   :  { %138 = vsyncpa [#allocation4], 1 }

</bundles_post_ra>
